<compile_context>
chip_gen: v7x
topology: tpu7x:2x2x1
jax: 0.10.0
libtpu: 0.0.40
codegen_flags: <defaults>
</compile_context>

<pallas_src>
import math

import jax
import jax.numpy as jnp
from jax.experimental import pallas as pl
from jax.experimental.pallas import tpu as pltpu

_NEG = -1e30  # finite "-inf" stand-in: exp(es*(x - m)) underflows to exactly 0


def _isomax_kernel(es_ref, logits_ref, targets_ref, loss_ref, m_sc, l_sc, t_sc):
    """Streaming logsumexp over class tiles + one-hot target gather.

    grid = (batch_tiles, class_tiles); class axis is the reduction axis.
    loss_ref is a (1, 1) SMEM block holding this batch tile's partial NLL sum.
    """
    k = pl.program_id(1)
    nk = pl.num_programs(1)
    es = es_ref[0]                                   # f32 scalar from SMEM

    @pl.when(k == 0)
    def _init():
        m_sc[...] = jnp.full_like(m_sc, _NEG)
        l_sc[...] = jnp.zeros_like(l_sc)
        t_sc[...] = jnp.zeros_like(t_sc)

    x = logits_ref[...].astype(jnp.float32)          # (tb, tc); cast in-kernel
    tb, tc = x.shape

    # --- online logsumexp of es * logits (raw logits kept; no scaled copy) ---
    blk_max = jnp.max(x, axis=1, keepdims=True)      # (tb, 1)
    m_new = jnp.maximum(m_sc[...], blk_max)
    alpha = jnp.exp(es * (m_sc[...] - m_new))        # rescale previous partial sum
    p = jnp.exp(es * (x - m_new))                    # EUP; pad columns underflow to 0
    l_sc[...] = alpha * l_sc[...] + jnp.sum(p, axis=1, keepdims=True)
    m_sc[...] = m_new

    # --- gather raw target logit for classes landing in this tile -----------
    col_ids = k * tc + jax.lax.broadcasted_iota(jnp.int32, (tb, tc), 1)
    tgt = targets_ref[...]                           # (tb, 1) int32
    t_sc[...] += jnp.sum(jnp.where(col_ids == tgt, x, 0.0), axis=1, keepdims=True)

    @pl.when(k == nk - 1)
    def _finalize():
        lse = es * m_sc[...] + jnp.log(l_sc[...])    # (tb, 1)
        nll = lse - es * t_sc[...]                   # (tb, 1)
        loss_ref[0, 0] = jnp.sum(nll)                # scalar -> SMEM output block


def isomax_loss(logits: jax.Array, targets: jax.Array,
                entropic_scale: float = 10.0) -> jax.Array:
    """IsoMaxLoss forward. logits: (B, C) float; targets: (B,) int."""
    B, C = logits.shape
    dt = logits.dtype

    # Pad to hardware-friendly shapes: sublane (8) on batch, lane (128) on class.
    Bp = pl.cdiv(B, 8) * 8
    Cp = pl.cdiv(C, 128) * 128

    # Tile sizes that divide the padded shapes and stay within a ~16 MiB
    # double-buffer budget (safe on v7x's 64 MiB VMEM; well inside v5e/v6e).
    tb = 8 * math.gcd(Bp // 8, 32)       # <= 256, multiple of 8, divides Bp
    tc = 128 * math.gcd(Cp // 128, 64)   # <= 8192, multiple of 128, divides Cp
    nb, nk = Bp // tb, Cp // tc

    neg = jnp.asarray(_NEG, dt)
    lp = jnp.full((Bp, Cp), neg, dtype=dt).at[:B, :C].set(logits)
    if Bp > B:
        # Padded rows: logit 0 at class 0, _NEG elsewhere, target 0 -> NLL == 0.
        lp = lp.at[B:, 0].set(jnp.zeros((), dt))
    tp = jnp.zeros((Bp, 1), jnp.int32).at[:B, 0].set(targets.astype(jnp.int32))
    es = jnp.asarray([entropic_scale], jnp.float32)

    grid_spec = pltpu.PrefetchScalarGridSpec(
        num_scalar_prefetch=1,                       # entropic_scale -> SMEM
        grid=(nb, nk),
        in_specs=[
            pl.BlockSpec((tb, tc), lambda i, k, es_ref: (i, k)),   # logits tile
            pl.BlockSpec((tb, 1), lambda i, k, es_ref: (i, 0)),    # targets column
        ],
        out_specs=pl.BlockSpec((1, 1), lambda i, k, es_ref: (i, 0),
                               memory_space=pltpu.MemorySpace.SMEM),
        scratch_shapes=[pltpu.VMEM((tb, 1), jnp.float32),   # running max
                        pltpu.VMEM((tb, 1), jnp.float32),   # running sum
                        pltpu.VMEM((tb, 1), jnp.float32)],  # running tgt logit
    )

    partial = pl.pallas_call(
        _isomax_kernel,
        out_shape=jax.ShapeDtypeStruct((nb, 1), jnp.float32),
        grid_spec=grid_spec,
        compiler_params=pltpu.CompilerParams(
            dimension_semantics=("parallel", "arbitrary"),
            vmem_limit_bytes=48 * 1024 * 1024),
    )(es, lp, tp)

    return jnp.sum(partial) / jnp.float32(B)


def isomax_loss_ref(logits, targets, entropic_scale=10.0):
    # Pure-JAX reference matching the PyTorch module.
    logp = jax.nn.log_softmax(entropic_scale * logits.astype(jnp.float32), axis=1)
    return -jnp.mean(logp[jnp.arange(logits.shape[0]), targets])


if __name__ == "__main__":
    key = jax.random.PRNGKey(0)
    k_logits, k_targets = jax.random.split(key)

    # Small but non-trivial: batch=16, classes=300 (pads to 384 -> 3 class tiles,
    # exercising the online logsumexp across the class grid axis).
    B, C = 16, 300
    logits = jax.random.normal(k_logits, (B, C), dtype=jnp.float32)
    targets = jax.random.randint(k_targets, (B,), 0, C, dtype=jnp.int32)

    # Default scale (10.0).
    loss = isomax_loss(logits, targets)
    jax.block_until_ready(loss)
    ref = isomax_loss_ref(logits, targets)
    assert jnp.allclose(loss, ref, rtol=1e-4, atol=1e-4), (loss, ref)

    # Non-default scale exercised via the SMEM scalar (no baked-in constant).
    loss2 = isomax_loss(logits, targets, entropic_scale=3.5)
    jax.block_until_ready(loss2)
    ref2 = isomax_loss_ref(logits, targets, entropic_scale=3.5)
    assert jnp.allclose(loss2, ref2, rtol=1e-4, atol=1e-4), (loss2, ref2)

    print("KERNEL_OK")
</pallas_src>

<mosaic_0001>
module attributes {stable_mosaic.version = 11 : i64} {
  func.func @_isomax_kernel(%arg0: i32, %arg1: i32, %arg2: memref<1xf32, #tpu.memory_space<smem>>, %arg3: memref<16x128xf32, #tpu.memory_space<vmem>>, %arg4: memref<16x1xi32, #tpu.memory_space<vmem>>, %arg5: memref<1x1xf32, #tpu.memory_space<smem>>, %arg6: memref<16x1xf32, #tpu.memory_space<vmem>>, %arg7: memref<16x1xf32, #tpu.memory_space<vmem>>, %arg8: memref<16x1xf32, #tpu.memory_space<vmem>>) attributes {dimension_semantics = [#tpu.dimension_semantics<parallel>, #tpu.dimension_semantics<arbitrary>], iteration_bounds = array<i64: 1, 3>, scalar_prefetch = 1 : i64, scratch_operands = 3 : i64, tpu.core_type = #tpu.core_type<tc>, window_params = [{transform_indices = @transform_0, window_bounds = array<i64: 16, 128>}, {transform_indices = @transform_1, window_bounds = array<i64: 16, 1>}, {transform_indices = @transform_2, window_bounds = array<i64: 1, 1>}]} {
    %c0 = arith.constant 0 : index
    %0 = memref.load %arg2[%c0] : memref<1xf32, #tpu.memory_space<smem>>
    %c0_i32 = arith.constant 0 : i32
    %1 = arith.cmpi eq, %arg1, %c0_i32 : i32
    %2 = arith.extui %1 : i1 to i32
    %c0_i32_0 = arith.constant 0 : i32
    %3 = arith.cmpi ne, %2, %c0_i32_0 : i32
    scf.if %3 {
      %cst_23 = arith.constant -1.000000e+30 : f32
      %43 = vector.broadcast %cst_23 : f32 to vector<16x1xf32>
      %c0_24 = arith.constant 0 : index
      %c0_25 = arith.constant 0 : index
      %44 = vector.load %arg6[%c0_24, %c0_25] : memref<16x1xf32, #tpu.memory_space<vmem>>, vector<16x1xf32>
      tpu.vector_store %arg6[%c0_24, %c0_25], %43 {strides = array<i32>} : memref<16x1xf32, #tpu.memory_space<vmem>>, vector<16x1xf32>,
      %cst_26 = arith.constant 0.000000e+00 : f32
      %45 = vector.broadcast %cst_26 : f32 to vector<16x1xf32>
      %c0_27 = arith.constant 0 : index
      %c0_28 = arith.constant 0 : index
      %46 = vector.load %arg7[%c0_27, %c0_28] : memref<16x1xf32, #tpu.memory_space<vmem>>, vector<16x1xf32>
      tpu.vector_store %arg7[%c0_27, %c0_28], %45 {strides = array<i32>} : memref<16x1xf32, #tpu.memory_space<vmem>>, vector<16x1xf32>,
      %cst_29 = arith.constant 0.000000e+00 : f32
      %47 = vector.broadcast %cst_29 : f32 to vector<16x1xf32>
      %c0_30 = arith.constant 0 : index
      %c0_31 = arith.constant 0 : index
      %48 = vector.load %arg8[%c0_30, %c0_31] : memref<16x1xf32, #tpu.memory_space<vmem>>, vector<16x1xf32>
      tpu.vector_store %arg8[%c0_30, %c0_31], %47 {strides = array<i32>} : memref<16x1xf32, #tpu.memory_space<vmem>>, vector<16x1xf32>,
    } else {
    }
    %c0_1 = arith.constant 0 : index
    %c0_2 = arith.constant 0 : index
    %4 = vector.load %arg3[%c0_1, %c0_2] : memref<16x128xf32, #tpu.memory_space<vmem>>, vector<16x128xf32>
    %cst = arith.constant dense<0xFF800000> : vector<16xf32>
    %5 = vector.multi_reduction <maximumf>, %4, %cst [1] : vector<16x128xf32> to vector<16xf32>
    %6 = vector.shape_cast %5 : vector<16xf32> to vector<16x1xf32>
    %c0_3 = arith.constant 0 : index
    %c0_4 = arith.constant 0 : index
    %7 = vector.load %arg6[%c0_3, %c0_4] : memref<16x1xf32, #tpu.memory_space<vmem>>, vector<16x1xf32>
    %8 = arith.maximumf %7, %6 : vector<16x1xf32>
    %c0_5 = arith.constant 0 : index
    %c0_6 = arith.constant 0 : index
    %9 = vector.load %arg6[%c0_5, %c0_6] : memref<16x1xf32, #tpu.memory_space<vmem>>, vector<16x1xf32>
    %10 = arith.subf %9, %8 : vector<16x1xf32>
    %11 = vector.broadcast %0 : f32 to vector<16x1xf32>
    %12 = arith.mulf %11, %10 : vector<16x1xf32>
    %13 = math.exp %12 : vector<16x1xf32>
    %14 = vector.broadcast %8 : vector<16x1xf32> to vector<16x128xf32>
    %15 = arith.subf %4, %14 : vector<16x128xf32>
    %16 = vector.broadcast %0 : f32 to vector<16x128xf32>
    %17 = arith.mulf %16, %15 : vector<16x128xf32>
    %18 = math.exp %17 : vector<16x128xf32>
    %c0_7 = arith.constant 0 : index
    %c0_8 = arith.constant 0 : index
    %19 = vector.load %arg7[%c0_7, %c0_8] : memref<16x1xf32, #tpu.memory_space<vmem>>, vector<16x1xf32>
    %20 = arith.mulf %13, %19 : vector<16x1xf32>
    %cst_9 = arith.constant dense<0.000000e+00> : vector<16xf32>
    %21 = vector.multi_reduction <add>, %18, %cst_9 [1] : vector<16x128xf32> to vector<16xf32>
    %22 = vector.shape_cast %21 : vector<16xf32> to vector<16x1xf32>
    %23 = arith.addf %20, %22 : vector<16x1xf32>
    %c0_10 = arith.constant 0 : index
    %c0_11 = arith.constant 0 : index
    %24 = vector.load %arg7[%c0_10, %c0_11] : memref<16x1xf32, #tpu.memory_space<vmem>>, vector<16x1xf32>
    tpu.vector_store %arg7[%c0_10, %c0_11], %23 {strides = array<i32>} : memref<16x1xf32, #tpu.memory_space<vmem>>, vector<16x1xf32>,
    %c0_12 = arith.constant 0 : index
    %c0_13 = arith.constant 0 : index
    %25 = vector.load %arg6[%c0_12, %c0_13] : memref<16x1xf32, #tpu.memory_space<vmem>>, vector<16x1xf32>
    tpu.vector_store %arg6[%c0_12, %c0_13], %8 {strides = array<i32>} : memref<16x1xf32, #tpu.memory_space<vmem>>, vector<16x1xf32>,
    %c128_i32 = arith.constant 128 : i32
    %26 = arith.muli %arg1, %c128_i32 : i32
    %27 = tpu.iota {dimensions = array<i32: 1>} : vector<16x128xi32>
    %28 = vector.broadcast %26 : i32 to vector<16x128xi32>
    %29 = arith.addi %28, %27 : vector<16x128xi32>
    %c0_14 = arith.constant 0 : index
    %c0_15 = arith.constant 0 : index
    %30 = vector.load %arg4[%c0_14, %c0_15] : memref<16x1xi32, #tpu.memory_space<vmem>>, vector<16x1xi32>
    %c0_16 = arith.constant 0 : index
    %c0_17 = arith.constant 0 : index
    %31 = vector.load %arg8[%c0_16, %c0_17] : memref<16x1xf32, #tpu.memory_space<vmem>>, vector<16x1xf32>
    %32 = vector.broadcast %30 : vector<16x1xi32> to vector<16x128xi32>
    %33 = arith.cmpi eq, %29, %32 : vector<16x128xi32>
    %cst_18 = arith.constant 0.000000e+00 : f32
    %34 = vector.broadcast %cst_18 : f32 to vector<16x128xf32>
    %35 = arith.select %33, %4, %34 : vector<16x128xi1>, vector<16x128xf32>
    %cst_19 = arith.constant dense<0.000000e+00> : vector<16xf32>
    %36 = vector.multi_reduction <add>, %35, %cst_19 [1] : vector<16x128xf32> to vector<16xf32>
    %37 = vector.shape_cast %36 : vector<16xf32> to vector<16x1xf32>
    %38 = arith.addf %31, %37 : vector<16x1xf32>
    %c0_20 = arith.constant 0 : index
    %c0_21 = arith.constant 0 : index
    %39 = vector.load %arg8[%c0_20, %c0_21] : memref<16x1xf32, #tpu.memory_space<vmem>>, vector<16x1xf32>
    tpu.vector_store %arg8[%c0_20, %c0_21], %38 {strides = array<i32>} : memref<16x1xf32, #tpu.memory_space<vmem>>, vector<16x1xf32>,
    %c2_i32 = arith.constant 2 : i32
    %40 = arith.cmpi eq, %arg1, %c2_i32 : i32
    %41 = arith.extui %40 : i1 to i32
    %c0_i32_22 = arith.constant 0 : i32
    %42 = arith.cmpi ne, %41, %c0_i32_22 : i32
    scf.if %42 {
      %c0_23 = arith.constant 0 : index
      %c0_24 = arith.constant 0 : index
      %43 = vector.load %arg6[%c0_23, %c0_24] : memref<16x1xf32, #tpu.memory_space<vmem>>, vector<16x1xf32>
      %44 = vector.broadcast %0 : f32 to vector<16x1xf32>
      %45 = arith.mulf %44, %43 : vector<16x1xf32>
      %c0_25 = arith.constant 0 : index
      %c0_26 = arith.constant 0 : index
      %46 = vector.load %arg7[%c0_25, %c0_26] : memref<16x1xf32, #tpu.memory_space<vmem>>, vector<16x1xf32>
      %47 = math.log %46 : vector<16x1xf32>
      %48 = arith.addf %45, %47 : vector<16x1xf32>
      %c0_27 = arith.constant 0 : index
      %c0_28 = arith.constant 0 : index
      %49 = vector.load %arg8[%c0_27, %c0_28] : memref<16x1xf32, #tpu.memory_space<vmem>>, vector<16x1xf32>
      %50 = vector.broadcast %0 : f32 to vector<16x1xf32>
      %51 = arith.mulf %50, %49 : vector<16x1xf32>
      %52 = arith.subf %48, %51 : vector<16x1xf32>
      %53 = vector.shape_cast %52 : vector<16x1xf32> to vector<1x16x1xf32>
      %cst_29 = arith.constant dense<0.000000e+00> : vector<1xf32>
      %54 = vector.multi_reduction <add>, %53, %cst_29 [1, 2] : vector<1x16x1xf32> to vector<1xf32>
      %55 = vector.shape_cast %54 : vector<1xf32> to vector<1x1x1xf32>
      %56 = vector.extract %55[0, 0, 0] : f32 from vector<1x1x1xf32>
      %c0_30 = arith.constant 0 : index
      %c0_31 = arith.constant 0 : index
      %57 = memref.load %arg5[%c0_30, %c0_31] : memref<1x1xf32, #tpu.memory_space<smem>>
      memref.store %56, %arg5[%c0_30, %c0_31] : memref<1x1xf32, #tpu.memory_space<smem>>
    } else {
    }
    return
  }
  func.func @transform_0(%arg0: i32, %arg1: i32, %arg2: memref<1xf32, #tpu.memory_space<smem>>) -> (i32, i32) {
    %c0_i32 = arith.constant 0 : i32
    return %arg0, %arg1 : i32, i32
  }
  func.func @transform_1(%arg0: i32, %arg1: i32, %arg2: memref<1xf32, #tpu.memory_space<smem>>) -> (i32, i32) {
    %c0_i32 = arith.constant 0 : i32
    %c0_i32_0 = arith.constant 0 : i32
    return %arg0, %c0_i32 : i32, i32
  }
  func.func @transform_2(%arg0: i32, %arg1: i32, %arg2: memref<1xf32, #tpu.memory_space<smem>>) -> (i32, i32) {
    %c0_i32 = arith.constant 0 : i32
    %c0_i32_0 = arith.constant 0 : i32
    return %arg0, %c0_i32 : i32, i32
  }
}

</mosaic_0001>

<bundles_post_ra>
// kernel: tpu_custom_call.1
= control target key start
LH: loop header
LB: loop body
LE: loop exit
PB: predicated region body
PF: predicated region fallthrough
CT: control target
= control target key end

     0   :  { %s794_s0 = inlined_call_operand.<no memory space> [shape: f32[1], index: 0, kind: input, shape index: {}]   ;;  %s795_s1 = inlined_call_operand.hbm [shape: f32[16,384], index: 1, kind: input, shape index: {}]   ;;  %s796_s2 = inlined_call_operand.vmem [shape: s32[16,1], index: 2, kind: input, shape index: {}]   ;;  %s797_s3 = inlined_call_operand.hbm [shape: f32[1,1], index: 3, kind: output, shape index: {}]  }
   0x1   :  { %8 = sst [smem:[#allocation6]] %s794_s0 }
   0x2   :  { %9 = vsyncpa [#allocation8], 0 }
   0x3   :  { %11 = vsyncpa [#allocation8 + $0x1], 0 }
   0x4   :  { %12 = vsyncpa [#allocation9], 0  ;;  %s637_s14 = smov 0   ;;  %s639_s15 = smov 0  }
   0x5   :  { %s641_s16 = smov 0   ;;  %s643_s17 = smov 0  }
   0x6   :  { %s645_s18 = smov 0   ;;  %s647_s19 = smov 0  }
   0x7 LB: > { %s409_s0 = sadd.s32 4294967295, %s604_s19   ;;  %s27_s20 = sadd.s32 1, %s600_s18  ;;  %s604_s19 = sphi %s647_s19, %s18_s19   ;;  %s600_s18 = sphi %s645_s18, %s806_s18   ;;  %s596_s17 = sphi %s643_s17, %s805_s17   ;;  %s592_s16 = sphi %s641_s16, %s804_s16   ;;  %s588_s15 = sphi %s639_s15, %s803_s15   ;;  %s584_s14 = sphi %s637_s14, %s802_s14  }
   0x8   : > { %p28_p0 = scmp.ge.s32.totalorder %s27_s20, 3  ;;  %s39_s21 = sadd.s32 1, %s592_s16 }
   0x9   : > { %p46_p1 = scmp.ne.s32.totalorder %s592_s16, %s588_s15  ;;  %p47_p2 = scmp.eq.s32.totalorder %s604_s19, 0 }
   0xa   : > { %s808_s20 = smov (%p28_p0, %s27_s20), 0  ;;  %p52_p4 = scmp.ne.s32.totalorder %s588_s15, %s584_s14 }
   0xb   : > { %p673_p3 = por %p47_p2, %p46_p1  ;;  %s35_s23 = ssub.s32 %s600_s18, %s808_s20 }
   0xc   : > { %p53_p5 = scmp.eq.s32.totalorder %s409_s0, 0  ;;  %p37_p6 = scmp.eq.s32.totalorder %s35_s23, 0 }
   0xd   : > { %p436_p8 = scmp.lt.s32.totalorder %s604_s19, 3  ;;  %s137_s26 = sand.u32 1, %s592_s16  }
   0xe   : > { %p682_p7 = por %p53_p5, %p52_p4  ;;  %s414_s27 = sshll.u32 %s600_s18, 7 }
   0xf   : > { %s688_s25 = scalar_select %p37_p6, %s592_s16, %s39_s21  }
  0x10   : > { %s413_s28 = sshll.u32 %s137_s26, 4  ;;  %s695_s4 = scalar_lea.hbm %s795_s1, %s414_s27 }
  0x11   : > { %s141_s5 = scalar_lea.vmem [#allocation7], %s413_s28  ;;  %p699_p9 = pnand %p436_p8, %p673_p3 }
  0x12   : > { %s150_s6 = sshll.u32 %s141_s5, 4  ;;  %s706_s8 = scalar_lea.sflag [#allocation8], %s137_s26  ;;  %s703_s6 = int_to_ptr.vmem [resolvable:$true] %s150_s6 }
  0x13   : > { %s508_s9 = scalar_lea.hbm %s695_s4, 256  ;;  %p510_p12 = pneg %p699_p9 }
  0x14   : > { %p509_p11 = scmp.ne.s32.totalorder %s695_s4, %s508_s9  ;;  %s513_s12 = scalar_lea.hbm %s795_s1, 768 }
  0x15   : > { %p514_p1 = scmp.lt.u32.totalorder %s695_s4, %s795_s1  ;;  %p515_p2 = scmp.lt.u32.totalorder %s513_s12, %s508_s9 }
  0x16   : > { %p511_p13 = pnand %p510_p12, %p509_p11  ;;  %p517_p4 = scmp.lt.u32.totalorder %s508_s9, %s695_s4 }
  0x17   : > { %p516_p3 = por %p515_p2, %p514_p1 }
  0x18   : > { %p512_p0 = pneg %p511_p13 }
  0x19   : > { %p518_p5 = por %p517_p4, %p516_p3 }
  0x1b   : > { %p519_p6 = pnand %p518_p5, %p512_p0 }
  0x1d   : > { %522 = shalt.err (!%p519_p6)
}
  0x1e   : > { %s523_s21 = scalar_lea.vmem %s703_s6, 256  ;;  %s606_s22 = smov [#allocation7]  }
  0x1f   : > { %p524_p8 = scmp.ne.s32.totalorder %s703_s6, %s523_s21  ;;  %s528_s23 = sshll.u32 %s606_s22, 4  ;;  %s529_s23 = int_to_ptr.vmem [resolvable:$false] %s528_s23 }
  0x20   : > { %s530_s26 = scalar_lea.vmem %s529_s23, 512  ;;  %p531_p10 = scmp.lt.s32.totalorder %s703_s6, %s529_s23 }
  0x21   : > { %p526_p11 = pnand %p524_p8, %p510_p12  ;;  %p532_p1 = scmp.lt.s32.totalorder %s530_s26, %s523_s21 }
  0x23   : > { %p527_p13 = pneg %p526_p11  ;;  %p533_p2 = por %p532_p1, %p531_p10 }
  0x25   : > { %p534_p3 = pnand %p533_p2, %p527_p13 }
  0x27   : > { %537 = shalt.err (!%p534_p3)
}
  0x28   : > { %s607_s27 = smov 384   ;;  %s608_s28 = smov 128  }
  0x29   : > { %s609_s29 = smov 8   ;;  %p158_p12 = scmp.lt.s32.totalorder %s604_s19, 4 }
  0x2a   : > { %435 = dma.hbm_to_vmem [thread:$0]  (!%p699_p9), %s695_s4, 256, %s703_s6, %s706_s8, %s607_s27, %s608_s28, %s609_s29  }
  0x2b   : > { %p801_p0 = scmp.ge.s32.totalorder %s604_s19, 1 }
  0x2d   : > { %p159_p4 = pnand %p801_p0, %p158_p12 }
  0x2e   : > { %s164_s30 = sand.u32 (!%p159_p4), 1, %s588_s15  }
  0x2f   : > { %162 = sbr.rel (%p159_p4) target bundleno = 750 (0x2ee), region = 28  ;;  %s416_s5 = sshll.u32 (!%p159_p4), %s164_s30, 4 }
  0x30   : > { %s165_s9 = scalar_lea.sflag (!%p159_p4), [#allocation8], %s164_s30  ;;  %s168_s10 = scalar_lea.vmem (!%p159_p4), [#allocation7], %s416_s5 }
  0x36   : > { %575 = dma.done.wait (%p682_p7), %s165_s9, 256  }
  0x37   : > { %577 = vsyncadd (%p682_p7), %s165_s9, 4294967040  ;;  %s742_s11 = sld [smem:[#allocation6]]  ;;  %p417_p10 = scmp.ne.s32.totalorder %s596_s17, 0 }
  0x38   : > { %vm201_vm0 = vcmask (!%p417_p10), 7168   ;;  %v610_v0 = vmov (!%p417_p10), -1e+30   ;;  %v611_v1 = vmov (!%p417_p10), 0.0  }
  0x39   : > { %200 = sbr.rel (%p417_p10) target bundleno = 64 (0x40), region = 36  ;;  %202 = vst.msk [vmem:[#allocation2] sm:$0xff] (!%p417_p10), %vm201_vm0, %v610_v0  ;;  %203 = vst.msk [vmem:[#allocation2 + $0x8] sm:$0xff] (!%p417_p10), %vm201_vm0, %v610_v0 }
  0x3a   : > { %204 = vst.msk [vmem:[#allocation3] sm:$0xff] (!%p417_p10), %vm201_vm0, %v611_v1  ;;  %205 = vst.msk [vmem:[#allocation3 + $0x8] sm:$0xff] (!%p417_p10), %vm201_vm0, %v611_v1 }
  0x3b   : > { %206 = vst.msk [vmem:[#allocation4] sm:$0xff] (!%p417_p10), %vm201_vm0, %v611_v1  ;;  %207 = vst.msk [vmem:[#allocation4 + $0x8] sm:$0xff] (!%p417_p10), %vm201_vm0, %v611_v1 }
  0x40 PF: > { %v208_v2 = vld [vmem:[%s168_s10] sm:$0xff]  ;;  %v209_v3 = vld [vmem:[%s168_s10 + $0x8] sm:$0xff]  ;;  %v612_v4 = vmov 0   ;;  %vm255_vm1 = vcmask 7168   ;;  %v261_v15 = vlaneseq  ;;  %s418_s8 = sshll.u32 %s596_s17, 7  ;;  %v220_v23 = vstv %s742_s11  ;;  %p419_p7 = scmp.ne.s32.totalorder %s596_s17, 2 }
  0x41   : > { %210 = vmax.xlane.f32.xlu0 %v208_v2  ;;  %494 = vset.pattern.permute.xlu1 %v612_v4  ;;  %v265_v5 = vld [vmem:[%s796_s2] sm:$0xff]  ;;  %v215_v9 = vld [vmem:[#allocation2 + $0x8] sm:$0xff]  ;;  %v263_v17 = vstv %s418_s8  ;;  %v245_v42 = vld [vmem:[#allocation3] sm:$0xff] }
  0x42   : > { %495 = vset.pattern.permute.xlu0 %v612_v4  ;;  %v214_v6 = vld [vmem:[#allocation2] sm:$0xff]  ;;  %v266_v14 = vld [vmem:[%s796_s2 + $0x8] sm:$0xff]  ;;  %v262_v16 = vand.u32 127, %v261_v15  ;;  %v246_v46 = vld [vmem:[#allocation3 + $0x8] sm:$0xff] }
  0x43   : > { %v267_v34 = vld [vmem:[#allocation4] sm:$0xff]  ;;  %v268_v51 = vld [vmem:[#allocation4 + $0x8] sm:$0xff] }
  0x44   : > { %v264_v18 = vadd.s32 %v263_v17, %v262_v16 }
  0x45   : > { %212 = vmax.xlane.f32.xlu0 %v209_v3 }
  0x5b   : > { %270 = vperm.xlu0 %495, %v265_v5  }
  0xce   : > { %v211_v7 = vpop.xlane.xlu0 %210 }
  0xcf   : > { %v216_v8 = vmax.f32 %v214_v6, %v211_v7 }
  0xd1   : > { %v218_v10 = vsub.f32 %v214_v6, %v216_v8  ;;  %258 = vst.msk [vmem:[#allocation2] sm:$0xff] %vm255_vm1, %v216_v8  ;;  %229 = vperm.xlu1 %494, %v216_v8  }
  0xd2   : > { %v213_v11 = vpop.xlane.xlu0 %212 }
  0xd3   : > { %v217_v12 = vmax.f32 %v215_v9, %v213_v11  ;;  %v221_v37 = vmul.f32 %v220_v23, %v218_v10 }
  0xd5   : > { %v219_v13 = vsub.f32 %v215_v9, %v217_v12  ;;  %259 = vst.msk [vmem:[#allocation2 + $0x8] sm:$0xff] %vm255_vm1, %v217_v12  ;;  %234 = vperm.xlu1 %494, %v217_v12   ;;  %v223_v39 = vmul.f32 1.442695, %v221_v37 }
  0xd7   : > { %v222_v38 = vmul.f32 %v220_v23, %v219_v13 }
  0xd8   : > { %v291_v56 = vld [vmem:[#allocation2] sm:$0xff] (!%p419_p7) }
  0xd9   : > { %273 = vperm.xlu1 %494, %v266_v14   ;;  %v225_v40 = vmul.f32 1.442695, %v222_v38  ;;  %v293_v59 = vmul.f32 (!%p419_p7), %v291_v56, %v220_v23 }
  0xda   : > { %v271_v19 = vpop.permute.xlu0 %270 }
  0xdb   : > { %vm275_vm2 = vcmp.eq.s32.totalorder %v264_v18, %v271_v19 }
  0xdc   : > { %v277_v20 = vsel %vm275_vm2, %v208_v2, 0.0  ;;  %v292_v57 = vld [vmem:[#allocation2 + $0x8] sm:$0xff] (!%p419_p7) }
  0xdd   : > { %279 = vadd.xlane.f32.xlu0 %v277_v20  ;;  %v294_v62 = vmul.f32 (!%p419_p7), %v292_v57, %v220_v23 }
 0x150   : > { %v230_v21 = vpop.permute.xlu1 %229 }
 0x151   : > { %v237_v22 = vsub.f32 %v208_v2, %v230_v21 }
 0x153   : > { %v239_v24 = vmul.f32 %v237_v22, %v220_v23 }
 0x154   : > { %v235_v25 = vpop.permute.xlu1 %234 }
 0x155   : > { %v241_v26 = vmul.f32 1.442695, %v239_v24  ;;  %v238_v27 = vsub.f32 %v209_v3, %v235_v25 }
 0x157   : > { %496 = vpow2.f32 %v241_v26  ;;  %v240_v28 = vmul.f32 %v238_v27, %v220_v23 }
 0x158   : > { %v274_v31 = vpop.permute.xlu1 %273 }
 0x159   : > { %v243_v29 = vmul.f32 1.442695, %v240_v28  ;;  %vm276_vm3 = vcmp.eq.s32.totalorder %v264_v18, %v274_v31 }
 0x15a   : > { %v278_v33 = vsel %vm276_vm3, %v209_v3, 0.0 }
 0x15b   : > { %498 = vpow2.f32 %v243_v29 }
 0x15c   : > { %500 = vpow2.f32 %v223_v39 }
 0x15d   : > { %502 = vpow2.f32 %v225_v40 }
 0x161   : > { %v497_v30 = vpop.eup %496 }
 0x162   : > { %249 = vadd.xlane.f32.xlu1 %v497_v30 }
 0x165   : > { %v499_v32 = vpop.eup %498 }
 0x166   : > { %251 = vadd.xlane.f32.xlu1 %v499_v32  ;;  %v501_v41 = vpop.eup %500 }
 0x167   : > { %v247_v43 = vmul.f32 %v501_v41, %v245_v42  ;;  %v503_v44 = vpop.eup %502 }
 0x168   : > { %v248_v48 = vmul.f32 %v503_v44, %v246_v46 }
 0x16a   : > { %281 = vadd.xlane.f32.xlu1 %v278_v33  ;;  %v280_v35 = vpop.xlane.xlu0 %279 }
 0x16b   : > { %v283_v36 = vadd.f32 %v280_v35, %v267_v34 }
 0x16d   : > { %285 = vst.msk [vmem:[#allocation4] sm:$0xff] %vm255_vm1, %v283_v36 }
 0x174   : > { %v303_v58 = vld [vmem:[#allocation4] sm:$0xff] (!%p419_p7) }
 0x175   : > { %v305_v1 = vmul.f32 (!%p419_p7), %v303_v58, %v220_v23 }
 0x1ef   : > { %v250_v45 = vpop.xlane.xlu1 %249 }
 0x1f0   : > { %v253_v47 = vadd.f32 %v250_v45, %v247_v43 }
 0x1f2   : > { %256 = vst.msk [vmem:[#allocation3] sm:$0xff] %vm255_vm1, %v253_v47 }
 0x1f3   : > { %v252_v49 = vpop.xlane.xlu1 %251 }
 0x1f4   : > { %v254_v50 = vadd.f32 %v252_v49, %v248_v48  ;;  %290 = sbr.rel (%p419_p7) target bundleno = 735 (0x2df), region = 40 }
 0x1f6   : > { %257 = vst.msk [vmem:[#allocation3 + $0x8] sm:$0xff] %vm255_vm1, %v254_v50 }
 0x1f7   : > { %v282_v52 = vpop.xlane.xlu1 %281 }
 0x1f8   : > { %v284_v53 = vadd.f32 %v282_v52, %v268_v51 }
 0x1f9   : > { %v295_v54 = vld [vmem:[#allocation3] sm:$0xff] (!%p419_p7) }
 0x1fa   : > { %286 = vst.msk [vmem:[#allocation4 + $0x8] sm:$0xff] %vm255_vm1, %v284_v53  ;;  %504 = vlog2.f32 (!%p419_p7), %v295_v54 }
 0x1fd   : > { %v296_v55 = vld [vmem:[#allocation3 + $0x8] sm:$0xff] }
 0x1fe   : > { %506 = vlog2.f32 %v296_v55 }
 0x201   : > { %v304_v60 = vld [vmem:[#allocation4 + $0x8] sm:$0xff] }
 0x202   : > { %v306_v3 = vmul.f32 %v304_v60, %v220_v23 }
 0x204   : > { %v505_v61 = vpop.eup %504 }
 0x205   : > { %v298_v0 = vmul.f32 0.6931472, %v505_v61 }
 0x207   : > { %v301_v4 = vadd.f32 %v298_v0, %v293_v59 }
 0x208   : > { %v507_v63 = vpop.eup %506 }
 0x209   : > { %v300_v2 = vmul.f32 0.6931472, %v507_v63  ;;  %v307_v6 = vsub.f32 %v301_v4, %v305_v1 }
 0x20b   : > { %v302_v5 = vadd.f32 %v300_v2, %v294_v62  ;;  %v309_v8 = vsel %vm255_vm1, %v307_v6, 0.0 }
 0x20d   : > { %v308_v7 = vsub.f32 %v302_v5, %v306_v3 }
 0x20f   : > { %v310_v9 = vsel %vm255_vm1, %v308_v7, 0.0 }
 0x210   : > { %v311_v10 = vadd.f32 %v310_v9, %v309_v8 }
 0x212   : > { %312 = vadd.xlane.f32.xlu0 %v311_v10 }
 0x29f   : > { %v313_v11 = vpop.xlane.xlu0 %312 }
 0x2a0   : > { %v314_v12 = vrot.slane %v313_v11, 4 }
 0x2a2   : > { %v315_v13 = vadd.f32 %v314_v12, %v313_v11 }
 0x2a4   : > { %v316_v14 = vrot.slane %v315_v13, 2 }
 0x2a6   : > { %v317_v15 = vadd.f32 %v316_v14, %v315_v13 }
 0x2a8   : > { %v318_v16 = vrot.slane %v317_v15, 1 }
 0x2aa   : > { %v319_v17 = vadd.f32 %v318_v16, %v317_v15 }
 0x2ac   : > { %424 = vpush %v319_v17 }
 0x2dd   : > { %s425_s17 = spop %424 }
 0x2de   : > { %322 = sst [smem:[#allocation10]] %s425_s17 }
 0x2df PF: > { %p437_p9 = scmp.eq.s32.totalorder %s409_s0, 2  ;;  %s538_s14 = scalar_lea.hbm %s797_s3, 16 }
 0x2e0   : > { %p539_p5 = scmp.ne.s32.totalorder %s797_s3, %s538_s14  ;;  %p544_p11 = scmp.lt.u32.totalorder %s538_s14, %s797_s3 }
 0x2e2   : > { %p540_p6 = pnand %p539_p5, %p437_p9 }
 0x2e4   : > { %p541_p8 = pneg %p540_p6 }
 0x2e6   : > { %p546_p13 = pnand %p544_p11, %p541_p8 }
 0x2e8   : > { %549 = shalt.err (!%p546_p13)
}
 0x2e9   : > { %s613_s27 = smov [#allocation10]  }
 0x2ea   : > { %429 = dma.smem_to_hbm (%p437_p9), %s613_s27, 16, %s797_s3, [#allocation9]  }
 0x2eb   : > { %579 = dma.done.wait (%p437_p9), [#allocation9], 16  }
 0x2ec   : > { %581 = vsyncadd (%p437_p9), [#allocation9], 4294967280 }
 0x2ed   : > { %338 = sfence }
 0x2ee PF: > { %s18_s19 = sadd.s32 1, %s604_s19   ;;  %s802_s14 = smov %s588_s15 }
 0x2ef   : > { %p15_p1 = scmp.ge.s32.totalorder %s18_s19, 5   ;;  %s803_s15 = smov %s592_s16 }
 0x2f0   : > { %s804_s16 = smov %s688_s25  ;;  %s805_s17 = smov %s600_s18 }
 0x2f1   : > { %s806_s18 = smov %s808_s20  ;;  %17 = sbr.rel (!%p15_p1) target bundleno = 7 (0x7), region = 78 }
 0x2f8   :  { %344 = vsyncpa [#allocation8], 1 }
 0x2f9   :  { %346 = vsyncpa [#allocation8 + $0x1], 1 }
 0x2fa   :  { %347 = vsyncpa [#allocation9], 1 }
 0x2fb   :  { %349 = vsyncpa [#allocation9 + $0x1], 1 }

</bundles_post_ra>
